<compile_context>
chip_gen: v7x
topology: tpu7x:2x2x1
jax: 0.10.0
libtpu: 0.0.40
codegen_flags: <defaults>
</compile_context>

<pallas_src>
import functools

import jax
import jax.numpy as jnp
from jax.experimental import pallas as pl
from jax.experimental.pallas import tpu as pltpu


# --------------------------------------------------------------------------------------
# Kernel
# --------------------------------------------------------------------------------------
def _critic_kernel(num_hidden_layers, x_ref, *refs):
    """Fused feature-major MLP for one batch tile.

    Ref layout (after x_ref, which is the (input_dim, tile) slice of x^T):
      (w_ref, b_ref) * num_hidden_layers   # VMEM: (out, in) weights, (out, 1) f32 biases
      w_out_ref                            # VMEM: (1, hidden[-1]) final-layer weights
      scalars_ref                          # SMEM: [alpha_0 .. alpha_{L-1}, b_out] (f32)
      o_ref                                # VMEM: (1, tile) lane-dense output row
    """
    layer_refs = refs[: 2 * num_hidden_layers]
    w_out_ref = refs[2 * num_hidden_layers]
    scalars_ref = refs[2 * num_hidden_layers + 1]
    o_ref = refs[2 * num_hidden_layers + 2]

    h = x_ref[...]                                    # (input_dim, tile), f32 from HBM
    for i in range(num_hidden_layers):
        w = layer_refs[2 * i][...]                    # (out, in), compute dtype
        b = layer_refs[2 * i + 1][...]                # (out, 1), f32
        # Plain MXU matmul; in-kernel cast of the activations to the weight dtype.
        pre = jnp.dot(w, h.astype(w.dtype),
                      preferred_element_type=jnp.float32) + b     # (out, tile), f32
        a = scalars_ref[i]                            # shared PReLU alpha (scalar, SMEM)
        h = jnp.where(pre > 0, pre, a * pre)          # lane-dense VPU elementwise, f32

    # Final Linear(hidden[-1], 1): (1, H) @ (H, tile) -> lane-dense (1, tile) row.
    q = jnp.dot(w_out_ref[...], h.astype(w_out_ref.dtype),
                preferred_element_type=jnp.float32)
    o_ref[...] = (q + scalars_ref[num_hidden_layers]).astype(o_ref.dtype)


# --------------------------------------------------------------------------------------
# Hardware / sizing helpers
# --------------------------------------------------------------------------------------
def _num_tensorcores():
    """TensorCores usable by megacore grid sharding (1 on v5e/v6e, 2 on v4/v5p/v7x)."""
    try:
        info = pltpu.get_tpu_info()
        for name in ("num_cores", "core_count", "num_tensorcores"):
            v = getattr(info, name, None)
            if v in (1, 2):
                return int(v)
    except Exception:
        pass
    try:
        kind = jax.devices()[0].device_kind.lower()
        if any(t in kind for t in ("v7", "v4", "v5p")):
            return 2
    except Exception:
        pass
    return 1


def _vmem_capacity_bytes():
    try:
        info = pltpu.get_tpu_info()
        v = getattr(info, "vmem_capacity_bytes", None)
        if v is not None and int(v) > 0:
            return int(v)
    except Exception:
        pass
    return 64 << 20   # conservative default (v7x); v5e/v6e have 128 MiB


def _round_up(v, m):
    return -(-v // m) * m


def _padded_block_bytes(shape, dtype):
    """Physical VMEM footprint of one buffer, including (8,128)/(16,128) tile padding."""
    itemsize = jnp.dtype(dtype).itemsize
    sublane = {4: 8, 2: 16, 1: 32}.get(itemsize, 8)
    if len(shape) == 1:
        return _round_up(max(shape[0], 1) * itemsize, 4096)
    rows = _round_up(shape[-2], sublane)
    cols = _round_up(shape[-1], 128)
    lead = 1
    for d in shape[:-2]:
        lead *= d
    return lead * rows * cols * itemsize


def _tile_bytes(tile, input_dim, hidden_shape):
    """Rough per-tile VMEM cost of the batch-dependent buffers (x tile + activations)."""
    cols = _round_up(tile, 128)
    widest = max([input_dim] + list(hidden_shape))
    b = 2 * _round_up(input_dim, 8) * cols * 4          # double-buffered f32 x^T tile
    b += 6 * _round_up(widest, 8) * cols * 4            # live f32 activation copies (slack)
    return b


def _pick_batch_tile(n, input_dim, hidden_shape, n_cores, budget_bytes=8 << 20):
    """Generation-aware batch tile.

    Single-TC chips (v5e/v6e): one grid step when the whole batch fits comfortably
    (nothing to pipeline; weights are constant).  Dual-TC chips: largest 128-multiple
    tile that divides n with an even step count so both cores stay busy.
    """
    def fits(t):
        return _tile_bytes(t, input_dim, hidden_shape) <= budget_bytes

    if n % 128 != 0:
        # TODO(synk): pad/mask path for batch sizes not divisible by 128 that exceed one tile.
        return n
    if n_cores <= 1 and fits(n):
        return n
    cands = [t for t in range(128, n + 1, 128) if n % t == 0]
    for t in sorted(cands, reverse=True):
        if fits(t) and (n // t) % n_cores == 0:
            return t
    for t in sorted(cands, reverse=True):
        if fits(t):
            return t
    return cands[0] if cands else n


def _vmem_limit_bytes(batch_tile, input_dim, hidden_shape, compute_dtype, capacity_bytes):
    cdt = jnp.dtype(compute_dtype)
    est = 2 * _padded_block_bytes((input_dim, batch_tile), jnp.float32)   # x^T tile (f32), 2-buffered
    est += 2 * _padded_block_bytes((1, batch_tile), jnp.float32)          # output row tile
    dims = [input_dim] + list(hidden_shape)
    params_bytes = 0
    for i, h in enumerate(hidden_shape):
        params_bytes += _padded_block_bytes((h, dims[i]), cdt)            # weight
        params_bytes += _padded_block_bytes((h, 1), jnp.float32)          # bias
    params_bytes += _padded_block_bytes((1, hidden_shape[-1]), cdt)       # w_out
    est += 2 * params_bytes                                               # constant blocks still 2-buffered
    widest = max(dims)
    est += 6 * _padded_block_bytes((widest, batch_tile), jnp.float32)     # activation working set
    est += 4 << 20                                                        # headroom
    cap = max(16 << 20, int(0.75 * capacity_bytes))
    return int(min(max(est, min(32 << 20, cap)), cap))


# --------------------------------------------------------------------------------------
# Public API
# --------------------------------------------------------------------------------------
def prepare_params(params, compute_dtype=jnp.float32):
    """One-time parameter prep (amortized outside the per-call path).

    Input `params` uses the native PyTorch layout:
      ws[i]  : (out_i, in_i) hidden-layer weights
      bs[i]  : (out_i,)      hidden-layer biases
      alphas : (L,)          shared PReLU alpha per layer
      w_out  : (1, hidden[-1]) final-layer weights
      b_out  : (1,)            final-layer bias
    """
    ws = [jnp.asarray(w, compute_dtype) for w in params["ws"]]
    bs = [jnp.asarray(b, jnp.float32).reshape(-1, 1) for b in params["bs"]]
    w_out = jnp.asarray(params["w_out"], compute_dtype).reshape(1, -1)
    scalars = jnp.concatenate(
        [jnp.asarray(params["alphas"], jnp.float32).reshape(-1),
         jnp.asarray(params["b_out"], jnp.float32).reshape(-1)])           # (L + 1,)
    return {"ws": ws, "bs": bs, "w_out": w_out, "scalars": scalars}


def critic_forward(x, prepped, *, batch_tile=None):
    """Critic forward pass with a single fused Pallas kernel.

    x:       (N, input_dim) float32 (no wrapper-side cast; any cast happens in-kernel)
    prepped: output of `prepare_params`
    Returns (N, 1) float32 Q-values.
    """
    N, input_dim = x.shape
    ws, bs = prepped["ws"], prepped["bs"]
    w_out, scalars = prepped["w_out"], prepped["scalars"]
    L = len(ws)
    hidden_shape = [w.shape[0] for w in ws]
    compute_dtype = ws[0].dtype

    n_cores = _num_tensorcores()
    if batch_tile is None:
        batch_tile = _pick_batch_tile(N, input_dim, hidden_shape, n_cores)
    assert N % batch_tile == 0, "N must be a multiple of batch_tile"
    assert batch_tile == N or batch_tile % 128 == 0, (
        "batch_tile must be a multiple of 128 (lane-dense tiles) or equal N")

    # Feature-major input: batch on the lane axis.  (Tiny transpose; fuses under jit.)
    x_t = x.T                                          # (input_dim, N), f32

    kernel = functools.partial(_critic_kernel, L)

    in_specs = [pl.BlockSpec((input_dim, batch_tile), lambda i: (0, i))]
    operands = [x_t]
    for w, b in zip(ws, bs):
        in_specs.append(pl.BlockSpec(w.shape, lambda i: (0, 0)))
        operands.append(w)
        in_specs.append(pl.BlockSpec(b.shape, lambda i: (0, 0)))
        operands.append(b)
    in_specs.append(pl.BlockSpec(w_out.shape, lambda i: (0, 0)))
    operands.append(w_out)
    in_specs.append(pl.BlockSpec(memory_space=pltpu.MemorySpace.SMEM))    # alphas + b_out
    operands.append(scalars)

    vmem_limit = _vmem_limit_bytes(batch_tile, input_dim, hidden_shape,
                                   compute_dtype, _vmem_capacity_bytes())

    out_row = pl.pallas_call(
        kernel,
        out_shape=jax.ShapeDtypeStruct((1, N), jnp.float32),
        grid_spec=pltpu.PrefetchScalarGridSpec(
            num_scalar_prefetch=0,
            grid=(N // batch_tile,),
            in_specs=in_specs,
            out_specs=pl.BlockSpec((1, batch_tile), lambda i: (0, i)),
        ),
        compiler_params=pltpu.CompilerParams(
            dimension_semantics=("parallel",),
            vmem_limit_bytes=vmem_limit),
    )(*operands)
    return out_row.reshape(N, 1)


# --------------------------------------------------------------------------------------
# Init + reference (PyTorch semantics)
# --------------------------------------------------------------------------------------
def init_critic_params(key, input_dim, hidden_shape):
    """Deterministic init mirroring nn.Linear (uniform +-1/sqrt(fan_in), weight (out,in))
    and nn.PReLU (single shared alpha = 0.25 per layer)."""
    ws, bs = [], []
    dims = [input_dim] + list(hidden_shape)
    for i in range(len(hidden_shape)):
        fan_in, fan_out = dims[i], dims[i + 1]
        bound = 1.0 / float(fan_in) ** 0.5
        key, k1, k2 = jax.random.split(key, 3)
        ws.append(jax.random.uniform(k1, (fan_out, fan_in), jnp.float32, -bound, bound))
        bs.append(jax.random.uniform(k2, (fan_out,), jnp.float32, -bound, bound))
    fan_in = hidden_shape[-1]
    bound = 1.0 / float(fan_in) ** 0.5
    key, k1, k2 = jax.random.split(key, 3)
    w_out = jax.random.uniform(k1, (1, fan_in), jnp.float32, -bound, bound)
    b_out = jax.random.uniform(k2, (1,), jnp.float32, -bound, bound)
    alphas = jnp.full((len(hidden_shape),), 0.25, jnp.float32)
    return {"ws": ws, "bs": bs, "alphas": alphas, "w_out": w_out, "b_out": b_out}


def critic_reference(x, params):
    """Pure-JAX f32 reference of the same forward pass (PyTorch layout params)."""
    h = x
    for w, b, a in zip(params["ws"], params["bs"], params["alphas"]):
        h = h @ w.T + b
        h = jnp.where(h > 0, h, a * h)
    return h @ params["w_out"].T + params["b_out"]


# --------------------------------------------------------------------------------------
# Demo / self-test
# --------------------------------------------------------------------------------------
if __name__ == "__main__":
    key = jax.random.PRNGKey(0)
    batch, input_dim = 256, 16
    hidden_shape = [32, 32]

    kx, kp = jax.random.split(key)
    x = jax.random.normal(kx, (batch, input_dim), jnp.float32)
    params = init_critic_params(kp, input_dim, hidden_shape)
    ref = critic_reference(x, params)

    fwd = jax.jit(critic_forward)

    # Default path: f32 compute everywhere (exact PyTorch semantics).
    prepped_f32 = prepare_params(params, jnp.float32)
    out = jax.block_until_ready(fwd(x, prepped_f32))
    assert out.shape == (batch, 1)
    assert jnp.allclose(out, ref, atol=1e-5, rtol=1e-5), "f32 Pallas output mismatch"

    # Opt-in fast path: bf16 weights, f32 x in HBM (cast happens inside the kernel),
    # f32 accumulation and f32 PReLU/bias math.
    prepped_bf16 = prepare_params(params, jnp.bfloat16)
    out_bf16 = jax.block_until_ready(fwd(x, prepped_bf16))
    assert out_bf16.shape == (batch, 1)
    assert jnp.allclose(out_bf16, ref, atol=5e-2, rtol=5e-2), "bf16 Pallas output mismatch"

    # Small batch not divisible by 128 -> single-tile fallback path.
    x_small = jax.random.normal(kx, (64, input_dim), jnp.float32)
    out_small = jax.block_until_ready(fwd(x_small, prepped_f32))
    assert out_small.shape == (64, 1)
    assert jnp.allclose(out_small, critic_reference(x_small, params),
                        atol=1e-5, rtol=1e-5), "small-batch Pallas output mismatch"

    print("KERNEL_OK")
</pallas_src>

<mosaic_0001>
module attributes {stable_mosaic.version = 11 : i64} {
  func.func @_critic_kernel(%arg0: i32, %arg1: memref<16x256xf32, #tpu.memory_space<vmem>>, %arg2: memref<32x16xf32, #tpu.memory_space<vmem>>, %arg3: memref<32x1xf32, #tpu.memory_space<vmem>>, %arg4: memref<32x32xf32, #tpu.memory_space<vmem>>, %arg5: memref<32x1xf32, #tpu.memory_space<vmem>>, %arg6: memref<1x32xf32, #tpu.memory_space<vmem>>, %arg7: memref<3xf32, #tpu.memory_space<smem>>, %arg8: memref<1x256xf32, #tpu.memory_space<vmem>>) attributes {dimension_semantics = [#tpu.dimension_semantics<parallel>], iteration_bounds = array<i64: 1>, scalar_prefetch = 0 : i64, scratch_operands = 0 : i64, tpu.core_type = #tpu.core_type<tc>, window_params = [{transform_indices = @transform_0, window_bounds = array<i64: 16, 256>}, {pipeline_mode = #tpu.pipeline_mode<synchronous>, transform_indices = @transform_1, window_bounds = array<i64: 32, 16>}, {pipeline_mode = #tpu.pipeline_mode<synchronous>, transform_indices = @transform_2, window_bounds = array<i64: 32, 1>}, {pipeline_mode = #tpu.pipeline_mode<synchronous>, transform_indices = @transform_3, window_bounds = array<i64: 32, 32>}, {pipeline_mode = #tpu.pipeline_mode<synchronous>, transform_indices = @transform_4, window_bounds = array<i64: 32, 1>}, {pipeline_mode = #tpu.pipeline_mode<synchronous>, transform_indices = @transform_5, window_bounds = array<i64: 1, 32>}, {transform_indices = @transform_6, window_bounds = array<i64: 3>}, {transform_indices = @transform_7, window_bounds = array<i64: 1, 256>}]} {
    %c0 = arith.constant 0 : index
    %c0_0 = arith.constant 0 : index
    %0 = vector.load %arg1[%c0, %c0_0] : memref<16x256xf32, #tpu.memory_space<vmem>>, vector<16x256xf32>
    %c0_1 = arith.constant 0 : index
    %c0_2 = arith.constant 0 : index
    %1 = vector.load %arg2[%c0_1, %c0_2] : memref<32x16xf32, #tpu.memory_space<vmem>>, vector<32x16xf32>
    %c0_3 = arith.constant 0 : index
    %c0_4 = arith.constant 0 : index
    %2 = vector.load %arg3[%c0_3, %c0_4] : memref<32x1xf32, #tpu.memory_space<vmem>>, vector<32x1xf32>
    %cst = arith.constant dense<0.000000e+00> : vector<32x256xf32>
    %3 = tpu.matmul %1, %0, %cst {dimension_numbers = #tpu.dot_dimension_numbers<[1], [0], [0], [1], [0, 0, 1, 1], [], []>} : vector<32x16xf32>, vector<16x256xf32>, vector<32x256xf32> -> vector<32x256xf32>
    %4 = vector.broadcast %2 : vector<32x1xf32> to vector<32x256xf32>
    %5 = arith.addf %3, %4 : vector<32x256xf32>
    %c0_5 = arith.constant 0 : index
    %6 = memref.load %arg7[%c0_5] : memref<3xf32, #tpu.memory_space<smem>>
    %cst_6 = arith.constant 0.000000e+00 : f32
    %7 = vector.broadcast %cst_6 : f32 to vector<32x256xf32>
    %8 = arith.cmpf ogt, %5, %7 : vector<32x256xf32>
    %9 = vector.broadcast %6 : f32 to vector<32x256xf32>
    %10 = arith.mulf %9, %5 : vector<32x256xf32>
    %11 = arith.select %8, %5, %10 : vector<32x256xi1>, vector<32x256xf32>
    %c0_7 = arith.constant 0 : index
    %c0_8 = arith.constant 0 : index
    %12 = vector.load %arg4[%c0_7, %c0_8] : memref<32x32xf32, #tpu.memory_space<vmem>>, vector<32x32xf32>
    %c0_9 = arith.constant 0 : index
    %c0_10 = arith.constant 0 : index
    %13 = vector.load %arg5[%c0_9, %c0_10] : memref<32x1xf32, #tpu.memory_space<vmem>>, vector<32x1xf32>
    %cst_11 = arith.constant dense<0.000000e+00> : vector<32x256xf32>
    %14 = tpu.matmul %12, %11, %cst_11 {dimension_numbers = #tpu.dot_dimension_numbers<[1], [0], [0], [1], [0, 0, 1, 1], [], []>} : vector<32x32xf32>, vector<32x256xf32>, vector<32x256xf32> -> vector<32x256xf32>
    %15 = vector.broadcast %13 : vector<32x1xf32> to vector<32x256xf32>
    %16 = arith.addf %14, %15 : vector<32x256xf32>
    %c1 = arith.constant 1 : index
    %17 = memref.load %arg7[%c1] : memref<3xf32, #tpu.memory_space<smem>>
    %cst_12 = arith.constant 0.000000e+00 : f32
    %18 = vector.broadcast %cst_12 : f32 to vector<32x256xf32>
    %19 = arith.cmpf ogt, %16, %18 : vector<32x256xf32>
    %20 = vector.broadcast %17 : f32 to vector<32x256xf32>
    %21 = arith.mulf %20, %16 : vector<32x256xf32>
    %22 = arith.select %19, %16, %21 : vector<32x256xi1>, vector<32x256xf32>
    %c0_13 = arith.constant 0 : index
    %c0_14 = arith.constant 0 : index
    %23 = vector.load %arg6[%c0_13, %c0_14] : memref<1x32xf32, #tpu.memory_space<vmem>>, vector<1x32xf32>
    %cst_15 = arith.constant dense<0.000000e+00> : vector<1x256xf32>
    %24 = tpu.matmul %23, %22, %cst_15 {dimension_numbers = #tpu.dot_dimension_numbers<[1], [0], [0], [1], [0, 0, 1, 1], [], []>} : vector<1x32xf32>, vector<32x256xf32>, vector<1x256xf32> -> vector<1x256xf32>
    %c2 = arith.constant 2 : index
    %25 = memref.load %arg7[%c2] : memref<3xf32, #tpu.memory_space<smem>>
    %26 = vector.broadcast %25 : f32 to vector<1x256xf32>
    %27 = arith.addf %24, %26 : vector<1x256xf32>
    %c0_16 = arith.constant 0 : index
    %c0_17 = arith.constant 0 : index
    %28 = vector.load %arg8[%c0_16, %c0_17] : memref<1x256xf32, #tpu.memory_space<vmem>>, vector<1x256xf32>
    tpu.vector_store %arg8[%c0_16, %c0_17], %27 {strides = array<i32>} : memref<1x256xf32, #tpu.memory_space<vmem>>, vector<1x256xf32>,
    return
  }
  func.func @transform_0(%arg0: i32) -> (i32, i32) {
    %c0_i32 = arith.constant 0 : i32
    %c0_i32_0 = arith.constant 0 : i32
    return %c0_i32, %arg0 : i32, i32
  }
  func.func @transform_1(%arg0: i32) -> (i32, i32) {
    %c0_i32 = arith.constant 0 : i32
    %c0_i32_0 = arith.constant 0 : i32
    %c0_i32_1 = arith.constant 0 : i32
    return %c0_i32, %c0_i32_0 : i32, i32
  }
  func.func @transform_2(%arg0: i32) -> (i32, i32) {
    %c0_i32 = arith.constant 0 : i32
    %c0_i32_0 = arith.constant 0 : i32
    %c0_i32_1 = arith.constant 0 : i32
    return %c0_i32, %c0_i32_0 : i32, i32
  }
  func.func @transform_3(%arg0: i32) -> (i32, i32) {
    %c0_i32 = arith.constant 0 : i32
    %c0_i32_0 = arith.constant 0 : i32
    %c0_i32_1 = arith.constant 0 : i32
    return %c0_i32, %c0_i32_0 : i32, i32
  }
  func.func @transform_4(%arg0: i32) -> (i32, i32) {
    %c0_i32 = arith.constant 0 : i32
    %c0_i32_0 = arith.constant 0 : i32
    %c0_i32_1 = arith.constant 0 : i32
    return %c0_i32, %c0_i32_0 : i32, i32
  }
  func.func @transform_5(%arg0: i32) -> (i32, i32) {
    %c0_i32 = arith.constant 0 : i32
    %c0_i32_0 = arith.constant 0 : i32
    %c0_i32_1 = arith.constant 0 : i32
    return %c0_i32, %c0_i32_0 : i32, i32
  }
  func.func @transform_6(%arg0: i32) -> i32 {
    %c0_i32 = arith.constant 0 : i32
    %c0_i32_0 = arith.constant 0 : i32
    return %c0_i32 : i32
  }
  func.func @transform_7(%arg0: i32) -> (i32, i32) {
    %c0_i32 = arith.constant 0 : i32
    %c0_i32_0 = arith.constant 0 : i32
    return %c0_i32, %arg0 : i32, i32
  }
}

</mosaic_0001>

<bundles_post_ra>
// kernel: critic_forward.1
= control target key start
LH: loop header
LB: loop body
LE: loop exit
PB: predicated region body
PF: predicated region fallthrough
CT: control target
= control target key end

     0   :  { %12 = vsyncpa [#allocation4], 0  ;;  %s688_s0 = inlined_call_operand.vmem [shape: f32[16,256], index: 0, kind: input, shape index: {}]   ;;  %s689_s1 = inlined_call_operand.vmem [shape: f32[32,16], index: 1, kind: input, shape index: {}]   ;;  %s690_s2 = inlined_call_operand.vmem [shape: f32[32,1], index: 2, kind: input, shape index: {}]   ;;  %s691_s3 = inlined_call_operand.vmem [shape: f32[32,32], index: 3, kind: input, shape index: {}]   ;;  %s692_s4 = inlined_call_operand.vmem [shape: f32[32,1], index: 4, kind: input, shape index: {}]   ;;  %s693_s5 = inlined_call_operand.vmem [shape: f32[1,32], index: 5, kind: input, shape index: {}]   ;;  %s694_s6 = inlined_call_operand.vmem [shape: f32[3], index: 6, kind: input, shape index: {}]   ;;  %s695_s7 = inlined_call_operand.hbm [shape: f32[1,256], index: 7, kind: output, shape index: {}]  }
   0x1   :  { %13 = vsyncpa [#allocation3], 0  ;;  %s32_s26 = sshll.u32 %s694_s6, 4  ;;  %s33_s26 = int_to_ptr.vmem [resolvable:$true] %s32_s26 }
   0x2   :  { %s509_s27 = scalar_lea.vmem %s33_s26, 16  ;;  %p514_p1 = scmp.lt.s32.totalorder %s33_s26, %s33_s26 }
   0x3   :  { %p510_p0 = scmp.ne.s32.totalorder %s33_s26, %s509_s27  ;;  %p515_p2 = scmp.lt.s32.totalorder %s509_s27, %s509_s27 }
   0x5   :  { %p516_p3 = por %p515_p2, %p514_p1 }
   0x7   :  { %p517_p4 = pnand %p516_p3, %p510_p0 }
   0x9   :  { %520 = shalt.err (!%p517_p4)
}
   0xa   :  { %s547_s28 = smov [#allocation2]  }
   0xb   :  { %35 = dma.vmem_to_smem %s33_s26, 16, %s547_s28, [#allocation4]  }
   0xc   :  { %543 = dma.done.wait [#allocation4], 16  }
   0xd   :  { %544 = vsyncadd [#allocation4], 4294967280 }
   0xe   :  { %39 = sfence }
   0xf   :  { %v41_v0 = vld [vmem:[%s688_s0 + $0x8] sm:$0xff]  ;;  %v43_v1 = vld [vmem:[%s688_s0 + $0x18] sm:$0xff]  ;;  %v40_v2 = vld [vmem:[%s688_s0] sm:$0xff]  ;;  %v548_v5 = vmov 0.0   ;;  %v549_v6 = vmov 0   ;;  %vm72_vm0 = vcmask 130048  }
  0x10   :  { %v482_v3 = vpack.c.bf16 %v43_v1, %v41_v0  ;;  %v42_v4 = vld [vmem:[%s688_s0 + $0x10] sm:$0xff]  ;;  %149 = vmatprep.mubr.f32.mxu0 %v548_v5  ;;  %507 = vset.pattern.permute.xlu0 %v549_v6  ;;  %v48_v8 = vld [vmem:[%s690_s2] sm:$0xff]  ;;  %v49_v11 = vld [vmem:[%s690_s2 + $0x8] sm:$0xff]  ;;  %s174_s11 = sld [smem:[#allocation2]]  ;;  %vm228_vm9 = vcmask 261120   ;;  %s479_s17 = sld [smem:[#allocation2 + $0x1]] }
  0x11   :  { %v484_v7 = vpack.c.bf16 %v42_v4, %v40_v2  ;;  %508 = vset.pattern.permute.xlu1 %v549_v6  ;;  %305 = vmatprep.mubr.f32.mxu1 %v548_v5  ;;  %v50_v9 = vld [vmem:[%s690_s2 + $0x10] sm:$0xff]  ;;  %v44_v10 = vld [vmem:[%s689_s1] sm:$0xff]  ;;  %v51_v12 = vld [vmem:[%s690_s2 + $0x18] sm:$0xff]  ;;  %s480_s19 = sld [smem:[#allocation2 + $0x2]]  ;;  %s551_s20 = smov [#allocation5]  }
  0x12   :  { %483 = vmatprep.subr.bf16.mxu0 %v482_v3  ;;  %54 = vperm.xlu0 %507, %v48_v8   ;;  %v45_v13 = vld [vmem:[%s689_s1 + $0x8] sm:$0xff]  ;;  %v204_v14 = vld [vmem:[%s692_s4] sm:$0xff]  ;;  %v46_v16 = vld [vmem:[%s689_s1 + $0x10] sm:$0xff]  ;;  %s462_s21 = sshll.u32 %s551_s20, 4  ;;  %s463_s21 = int_to_ptr.vmem [resolvable:$true] %s462_s21 }
  0x13   :  { %485 = vmatpush1.bf16.msra.mxu0 %v484_v7  ;;  %64 = vperm.xlu1 %508, %v50_v9   ;;  %v205_v15 = vld [vmem:[%s692_s4 + $0x8] sm:$0xff]  ;;  %v206_v17 = vld [vmem:[%s692_s4 + $0x10] sm:$0xff]  ;;  %v207_v18 = vld [vmem:[%s692_s4 + $0x18] sm:$0xff]  ;;  %p526_p6 = scmp.lt.s32.totalorder %s463_s21, %s463_s21 }
  0x14   :  { %v47_v19 = vld [vmem:[%s689_s1 + $0x18] sm:$0xff]  ;;  %v200_v61 = vld [vmem:[%s691_s3] sm:$0xff]  ;;  %v201_v62 = vld [vmem:[%s691_s3 + $0x8] sm:$0xff] }
  0x15   :  { %v202_v63 = vld [vmem:[%s691_s3 + $0x10] sm:$0xff]  ;;  %v203_v0 = vld [vmem:[%s691_s3 + $0x18] sm:$0xff] }
  0x16   :  { %471 = vmatmul.mubr.msk.f32.vlgmr.msra.gmra.mrb[0].mxu0 %vm72_vm0, %v44_v10  ;;  %59 = vperm.xlu0 %507, %v49_v11   ;;  %v183_v24 = vstv %s174_s11  ;;  %v339_v6 = vstv %s479_s17 }
  0x17   :  { %155 = vmatprep.mubr.f32.mxu0 %v548_v5  ;;  %69 = vperm.xlu1 %508, %v51_v12  }
  0x1a   :  { %472 = vmatmul.mubr.msk.f32.gmra.mrb[2].mxu0 %vm72_vm0, %v45_v13  ;;  %210 = vperm.xlu0 %507, %v204_v14  }
  0x1b   :  { %161 = vmatprep.mubr.f32.mxu0 %v548_v5  ;;  %215 = vperm.xlu1 %508, %v205_v15  }
  0x1e   :  { %473 = vmatmul.mubr.msk.f32.gmra.mrb[4].mxu0 %vm72_vm0, %v46_v16  ;;  %220 = vperm.xlu0 %507, %v206_v17  }
  0x1f   :  { %167 = vmatprep.mubr.f32.mxu0 %v548_v5  ;;  %225 = vperm.xlu1 %508, %v207_v18  }
  0x22   :  { %474 = vmatmul.mubr.msk.f32.gmra.mrb[6].mxu0 %vm72_vm0, %v47_v19 }
  0x23   :  { %426 = vmatprep.mubr.f32.mxu0 %v548_v5 }
  0x91   :  { %v55_v20 = vpop.permute.xlu0 %54 }
  0x92   :  { %v65_v31 = vpop.permute.xlu1 %64 }
  0x95   :  { %v60_v26 = vpop.permute.xlu0 %59 }
  0x96   :  { %v70_v46 = vpop.permute.xlu1 %69 }
  0x99   :  { %v211_v1 = vpop.permute.xlu0 %210 }
  0x9a   :  { %v216_v8 = vpop.permute.xlu1 %215 }
  0x9d   :  { %v221_v15 = vpop.permute.xlu0 %220 }
  0xe9   :  { %v151_v21 = vpop.f32.mrb[0].mxu0 }
  0xea   :  { %v152_v22 = vadd.f32 %v151_v21, %v55_v20  ;;  %v153_v23 = vpop.f32.mrb[1].mxu0 }
  0xeb   :  { %v154_v25 = vadd.f32 %v153_v23, %v55_v20 }
  0xec   :  { %v184_v28 = vmul.f32 %v183_v24, %v152_v22  ;;  %vm175_vm1 = vcmp.gt.f32.partialorder %v152_v22, 0.0 }
  0xed   :  { %v157_v27 = vpop.f32.mrb[2].mxu0  ;;  %v185_v32 = vmul.f32 %v183_v24, %v154_v25  ;;  %vm176_vm2 = vcmp.gt.f32.partialorder %v154_v25, 0.0 }
  0xee   :  { %v158_v29 = vadd.f32 %v157_v27, %v60_v26  ;;  %v159_v30 = vpop.f32.mrb[3].mxu0  ;;  %v192_v39 = vsel %vm175_vm1, %v152_v22, %v184_v28  ;;  %v226_v27 = vpop.permute.xlu1 %225 }
  0xef   :  { %v160_v33 = vadd.f32 %v159_v30, %v60_v26  ;;  %v193_v42 = vsel %vm176_vm2, %v154_v25, %v185_v32 }
  0xf0   :  { %v186_v34 = vmul.f32 %v183_v24, %v158_v29  ;;  %vm177_vm3 = vcmp.gt.f32.partialorder %v158_v29, 0.0 }
  0xf1   :  { %v187_v35 = vmul.f32 %v183_v24, %v160_v33  ;;  %v163_v36 = vpop.f32.mrb[4].mxu0  ;;  %vm178_vm4 = vcmp.gt.f32.partialorder %v160_v33, 0.0 }
  0xf2   :  { %v164_v37 = vadd.f32 %v163_v36, %v65_v31  ;;  %v165_v38 = vpop.f32.mrb[5].mxu0  ;;  %v194_v40 = vsel %vm177_vm3, %v158_v29, %v186_v34 }
  0xf3   :  { %v166_v41 = vadd.f32 %v165_v38, %v65_v31  ;;  %v195_v43 = vsel %vm178_vm4, %v160_v33, %v187_v35  ;;  %v488_v44 = vpack.c.bf16 %v194_v40, %v192_v39 }
  0xf4   :  { %v486_v45 = vpack.c.bf16 %v195_v43, %v193_v42  ;;  %v188_v48 = vmul.f32 %v183_v24, %v164_v37  ;;  %vm179_vm5 = vcmp.gt.f32.partialorder %v164_v37, 0.0  ;;  %v356_v42 = vld [vmem:[%s693_s5] sm:$0x1]  ;;  %v550_v43 = vmov 1966171168   ;;  %s521_s5 = scalar_lea.vmem %s463_s21, 32 }
  0xf5   :  { %v169_v47 = vpop.f32.mrb[6].mxu0  ;;  %v189_v51 = vmul.f32 %v183_v24, %v166_v41  ;;  %vm180_vm6 = vcmp.gt.f32.partialorder %v166_v41, 0.0  ;;  %p522_p5 = scmp.ne.s32.totalorder %s463_s21, %s521_s5  ;;  %p527_p7 = scmp.lt.s32.totalorder %s521_s5, %s521_s5 }
  0xf6   :  { %v170_v49 = vadd.f32 %v169_v47, %v70_v46  ;;  %v171_v50 = vpop.f32.mrb[7].mxu0  ;;  %487 = vmatprep.subr.bf16.mxu1 %v486_v45  ;;  %v196_v55 = vsel %vm179_vm5, %v164_v37, %v188_v48  ;;  %v439_v45 = vlaneseq }
  0xf7   :  { %v172_v52 = vadd.f32 %v171_v50, %v70_v46  ;;  %489 = vmatpush1.bf16.msra.mxu1 %v488_v44  ;;  %v197_v57 = vsel %vm180_vm6, %v166_v41, %v189_v51  ;;  %v437_v44 = vunpack.c.l.s4 %v550_v43  ;;  %v358_v46 = vstv %s480_s19  ;;  %p528_p8 = por %p527_p7, %p526_p6 }
  0xf8   :  { %vm181_vm7 = vcmp.gt.f32.partialorder %v170_v49, 0.0  ;;  %v190_v53 = vmul.f32 %v183_v24, %v170_v49  ;;  %v440_v48 = vshrl.u32 %v439_v45, 7  ;;  %vm453_vm2 = vcmp.lt.s32.totalorder %v439_v45, 256 }
  0xf9   :  { %vm182_vm8 = vcmp.gt.f32.partialorder %v172_v52, 0.0  ;;  %v191_v54 = vmul.f32 %v183_v24, %v172_v52  ;;  %v438_v47 = vunpack.c.0.s8 %v437_v44  ;;  %p529_p9 = pnand %p528_p8, %p522_p5 }
  0xfa   :  { %v198_v56 = vsel %vm181_vm7, %v170_v49, %v190_v53 }
  0xfb   :  { %v199_v58 = vsel %vm182_vm8, %v172_v52, %v191_v54  ;;  %v492_v59 = vpack.c.bf16 %v198_v56, %v196_v55  ;;  %v441_v53 = vsub.s32 %v438_v47, %v440_v48 }
  0xfc   :  { %v490_v60 = vpack.c.bf16 %v199_v58, %v197_v57 }
  0xfe   :  { %491 = vmatprep.subr.bf16.mxu1 %v490_v60 }
  0xff   :  { %493 = vmatpush1.bf16.msra.mxu1 %v492_v59 }
 0x102   :  { %475 = vmatmul.mubr.msk.f32.vlgmr.msra.gmra.mrb[0].mxu1 %vm228_vm9, %v200_v61 }
 0x103   :  { %311 = vmatprep.mubr.f32.mxu1 %v548_v5 }
 0x106   :  { %476 = vmatmul.mubr.msk.f32.gmra.mrb[2].mxu1 %vm228_vm9, %v201_v62 }
 0x107   :  { %317 = vmatprep.mubr.f32.mxu1 %v548_v5 }
 0x10a   :  { %477 = vmatmul.mubr.msk.f32.gmra.mrb[4].mxu1 %vm228_vm9, %v202_v63 }
 0x10b   :  { %323 = vmatprep.mubr.f32.mxu1 %v548_v5 }
 0x10e   :  { %478 = vmatmul.mubr.msk.f32.gmra.mrb[6].mxu1 %vm228_vm9, %v203_v0 }
 0x1d5   :  { %v307_v2 = vpop.f32.mrb[0].mxu1 }
 0x1d6   :  { %v308_v3 = vadd.f32 %v307_v2, %v211_v1  ;;  %v309_v4 = vpop.f32.mrb[1].mxu1 }
 0x1d7   :  { %v310_v7 = vadd.f32 %v309_v4, %v211_v1 }
 0x1d8   :  { %v340_v10 = vmul.f32 %v339_v6, %v308_v3  ;;  %vm331_vm10 = vcmp.gt.f32.partialorder %v308_v3, 0.0 }
 0x1d9   :  { %v313_v9 = vpop.f32.mrb[2].mxu1  ;;  %v341_v5 = vmul.f32 %v339_v6, %v310_v7  ;;  %vm332_vm11 = vcmp.gt.f32.partialorder %v310_v7, 0.0 }
 0x1da   :  { %v314_v11 = vadd.f32 %v313_v9, %v216_v8  ;;  %v315_v12 = vpop.f32.mrb[3].mxu1  ;;  %v348_v18 = vsel %vm331_vm10, %v308_v3, %v340_v10 }
 0x1db   :  { %v316_v13 = vadd.f32 %v315_v12, %v216_v8  ;;  %v349_v24 = vsel %vm332_vm11, %v310_v7, %v341_v5 }
 0x1dc   :  { %vm333_vm12 = vcmp.gt.f32.partialorder %v314_v11, 0.0  ;;  %v342_v14 = vmul.f32 %v339_v6, %v314_v11 }
 0x1dd   :  { %vm334_vm13 = vcmp.gt.f32.partialorder %v316_v13, 0.0  ;;  %v343_v16 = vmul.f32 %v339_v6, %v316_v13  ;;  %v319_v17 = vpop.f32.mrb[4].mxu1 }
 0x1de   :  { %v350_v19 = vsel %vm333_vm12, %v314_v11, %v342_v14  ;;  %v320_v20 = vadd.f32 %v319_v17, %v221_v15  ;;  %v321_v21 = vpop.f32.mrb[5].mxu1 }
 0x1df   :  { %v496_v22 = vpack.c.bf16 %v350_v19, %v348_v18  ;;  %v322_v23 = vadd.f32 %v321_v21, %v221_v15  ;;  %v351_v25 = vsel %vm334_vm13, %v316_v13, %v343_v16 }
 0x1e0   :  { %v494_v26 = vpack.c.bf16 %v351_v25, %v349_v24  ;;  %v344_v29 = vmul.f32 %v339_v6, %v320_v20  ;;  %vm335_vm14 = vcmp.gt.f32.partialorder %v320_v20, 0.0 }
 0x1e1   :  { %v325_v28 = vpop.f32.mrb[6].mxu1  ;;  %v345_v32 = vmul.f32 %v339_v6, %v322_v23  ;;  %vm336_vm15 = vcmp.gt.f32.partialorder %v322_v23, 0.0 }
 0x1e2   :  { %v326_v30 = vadd.f32 %v325_v28, %v226_v27  ;;  %v327_v31 = vpop.f32.mrb[7].mxu1  ;;  %495 = vmatprep.subr.bf16.mxu0 %v494_v26  ;;  %v352_v36 = vsel %vm335_vm14, %v320_v20, %v344_v29 }
 0x1e3   :  { %v328_v33 = vadd.f32 %v327_v31, %v226_v27  ;;  %497 = vmatpush1.bf16.msra.mxu0 %v496_v22  ;;  %v353_v39 = vsel %vm336_vm15, %v322_v23, %v345_v32 }
 0x1e4   :  { %vm337_vm0 = vcmp.gt.f32.partialorder %v326_v30, 0.0  ;;  %v346_v34 = vmul.f32 %v339_v6, %v326_v30 }
 0x1e5   :  { %vm338_vm1 = vcmp.gt.f32.partialorder %v328_v33, 0.0  ;;  %v347_v35 = vmul.f32 %v339_v6, %v328_v33 }
 0x1e6   :  { %v354_v37 = vsel %vm337_vm0, %v326_v30, %v346_v34 }
 0x1e7   :  { %v500_v38 = vpack.c.bf16 %v354_v37, %v352_v36  ;;  %v355_v40 = vsel %vm338_vm1, %v328_v33, %v347_v35 }
 0x1e8   :  { %v498_v41 = vpack.c.bf16 %v355_v40, %v353_v39 }
 0x1ea   :  { %499 = vmatprep.subr.bf16.mxu0 %v498_v41 }
 0x1eb   :  { %501 = vmatpush1.bf16.msra.mxu0 %v500_v38 }
 0x1ee   :  { %481 = vmatmul.mubr.msk.f32.vlgmr.msra.gmra.mrb[8].mxu0 %vm228_vm9, %v356_v42 }
 0x2c1   :  { %v428_v49 = vpop.f32.mrb[8].mxu0 }
 0x2c2   :  { %v429_v50 = vadd.f32 %v428_v49, %v358_v46  ;;  %v430_v51 = vpop.f32.mrb[9].mxu0 }
 0x2c3   :  { %v431_v52 = vadd.f32 %v430_v51, %v358_v46 }
 0x2c5   :  { %v435_v54 = vcombine.low %v429_v50, %v431_v52 }
 0x2c7   :  { %v442_v55 = vrot.slane %v435_v54, %v441_v53 }
 0x2c9   :  { %v449_v56 = vrot.slane %v442_v55, %v441_v53 }
 0x2cb   :  { %455 = vst.msk [vmem:[#allocation5] sm:$0x3] %vm453_vm2, %v449_v56 }
 0x2cc   :  { %532 = shalt.err (!%p529_p9)
}
 0x2cd   :  { %s533_s24 = scalar_lea.hbm %s695_s7, 32 }
 0x2ce   :  { %p534_p10 = scmp.ne.s32.totalorder %s695_s7, %s533_s24  ;;  %p537_p11 = scmp.lt.u32.totalorder %s533_s24, %s695_s7 }
 0x2d0   :  { %p539_p12 = pnand %p537_p11, %p534_p10 }
 0x2d2   :  { %542 = shalt.err (!%p539_p12)
}
 0x2d3   :  { %465 = dma.vmem_to_hbm [thread:$0]  %s463_s21, 32, %s695_s7, [#allocation3]  }
 0x2d4   :  { %545 = dma.done.wait [#allocation3], 32  }
 0x2d5   :  { %546 = vsyncadd [#allocation3], 4294967264 }
 0x2d6   :  { %469 = vsyncpa [#allocation3], 1 }
 0x2d7   :  { %470 = vsyncpa [#allocation4], 1 }

</bundles_post_ra>
